<compile_context>
chip_gen: v5e
topology: v5e:2x2
jax: 0.10.0
libtpu: 0.0.40
codegen_flags: <defaults>
</compile_context>

<pallas_src>
import functools

import numpy as np
import jax
import jax.numpy as jnp
from jax import lax
from jax.experimental import pallas as pl
from jax.experimental.pallas import tpu as pltpu


def _round_up(x, m):
    return (x + m - 1) // m * m


# ----------------------------------------------------------------------------- kernel

def _conv_bias_mish_kernel(x_ref, w_ref, b_ref, o_ref, *, wp, tq):
    """Fused 3x3 conv (9 shifted bf16 matmuls) + bias + mish for one activation row-strip.

    x_ref: (1, Cin, L)      bf16 flattened zero-framed strip (1-row halo top/bottom,
                            1 extra zero element at each end); L = (TRH+2)*Wp + 2
    w_ref: (9, Coutp, Cin)  bf16 per-tap weights, tap = kh*3 + kw
    b_ref: (Coutp, 1)       f32 bias (zero for padded channels)
    o_ref: (1, Coutp, TQ)   f32 mish(conv + bias); TQ = TRH*Wp spatial positions on lanes
    """
    coutp = o_ref.shape[1]
    acc = jnp.zeros((coutp, tq), jnp.float32)
    for tap in range(9):                                   # static unroll, 9 MXU dots
        kh, kw = divmod(tap, 3)
        xt = x_ref[0, :, pl.ds(kh * wp + kw, tq)]          # (Cin, TQ) shifted tap slab
        acc = acc + jnp.dot(w_ref[tap], xt, preferred_element_type=jnp.float32)
    y = acc + b_ref[...]                                   # lane-broadcast bias

    # mish(y) = y * tanh(softplus(y)) = y * (t^2 + 2t) / (t^2 + 2t + 2),  t = exp(y)
    # (exact identity).  One EUP exp + approx reciprocal + 1 Newton step (VPU-only).
    t = jnp.exp(jnp.minimum(y, 20.0))
    num = t * (t + 2.0)
    den = num + 2.0
    rcp = pl.reciprocal(den, approx=True)
    rcp = rcp * (2.0 - den * rcp)                          # Newton refine -> ~f32 accuracy
    o_ref[0] = jnp.where(y > 20.0, y, y * num * rcp)       # torch softplus threshold=20


# ----------------------------------------------------------------------------- tiling

def _pick_row_tile(h, wp, cin, coutp):
    """Largest image-row tile whose double-buffered blocks fit a conservative VMEM budget
    (safe on v7x's 64 MiB physical / 32 MiB default scoped VMEM)."""
    budget = 8 * 1024 * 1024
    per_row = 2 * cin * wp * 2 + 3 * coutp * wp * 4   # bf16 strip x2 + f32 out x2 + acc
    max_rows_vmem = max(1, budget // per_row)
    max_rows_lane = max(1, 8192 // wp)                # keep per-step lane extent bounded
    return int(min(h, max_rows_vmem, max_rows_lane))


# ----------------------------------------------------------------------------- forward

@functools.partial(jax.jit, static_argnames=("up_scale",))
def upsample_block_forward(x_nchw, w_oihw, bias, up_scale):
    n, cin, h, w = x_nchw.shape
    r = up_scale
    cout = cin * r * r
    assert w_oihw.shape == (cout, cin, 3, 3)

    wp = w + 2
    coutp = _round_up(cout, 8)                  # sublane granule only (NOT 128 lanes)
    trh = _pick_row_tile(h, wp, cin, coutp)
    n_ht = -(-h // trh)
    hpad = n_ht * trh

    # Zero-pad NCHW: conv halo (1 px all around) + bottom rows so H tiles evenly.
    xp = jnp.pad(x_nchw, ((0, 0), (0, 0), (1, 1 + hpad - h), (1, 1))).astype(jnp.bfloat16)

    # Overlapping row strips with a 1-row halo on each side; flatten (rows, Wp) and add one
    # zero element on each end so every shifted tap slice stays in bounds.
    strips = jnp.stack([xp[:, :, t * trh: t * trh + trh + 2, :] for t in range(n_ht)], axis=1)
    strips = strips.reshape(n, n_ht, cin, (trh + 2) * wp)
    strips = jnp.pad(strips, ((0, 0), (0, 0), (0, 0), (1, 1)))
    L = (trh + 2) * wp + 2
    strips = strips.reshape(n * n_ht, cin, L)

    # (Cout, Cin, 3, 3) -> (9, Coutp, Cin), tap index = kh*3 + kw; bf16 operands.
    wt = jnp.transpose(w_oihw, (2, 3, 0, 1)).reshape(9, cout, cin)
    wt = jnp.pad(wt, ((0, 0), (0, coutp - cout), (0, 0))).astype(jnp.bfloat16)
    b_col = jnp.pad(bias.astype(jnp.float32), (0, coutp - cout)).reshape(coutp, 1)

    tq = trh * wp
    g = n * n_ht

    cost = pl.CostEstimate(
        flops=2 * g * 9 * coutp * cin * tq,
        transcendentals=2 * g * coutp * tq,
        bytes_accessed=2 * g * cin * L + 2 * 9 * coutp * cin + 4 * coutp + 4 * g * coutp * tq,
    )

    kernel = functools.partial(_conv_bias_mish_kernel, wp=wp, tq=tq)
    y = pl.pallas_call(
        kernel,
        out_shape=jax.ShapeDtypeStruct((g, coutp, tq), jnp.float32),
        grid=(g,),
        in_specs=[
            pl.BlockSpec((1, cin, L), lambda i: (i, 0, 0)),
            pl.BlockSpec((9, coutp, cin), lambda i: (0, 0, 0)),
            pl.BlockSpec((coutp, 1), lambda i: (0, 0)),
        ],
        out_specs=pl.BlockSpec((1, coutp, tq), lambda i: (i, 0, 0)),
        compiler_params=pltpu.CompilerParams(
            dimension_semantics=("parallel",),
            vmem_limit_bytes=32 * 1024 * 1024),
        cost_estimate=cost,
    )(strips, wt, b_col)

    # Drop padded channels, the garbage border columns, and bottom pad rows (XLA glue).
    y = y.reshape(n, n_ht, coutp, trh, wp)[:, :, :cout, :, 1:w + 1]
    y = jnp.transpose(y, (0, 2, 1, 3, 4)).reshape(n, cout, hpad, w)[:, :, :h, :]

    # PixelShuffle (mish already applied in-kernel; elementwise, commutes with shuffle).
    y = y.reshape(n, cin, r, r, h, w)
    y = jnp.transpose(y, (0, 1, 4, 2, 5, 3)).reshape(n, cin, h * r, w * r)
    return y


# ----------------------------------------------------------------------------- reference

def upsample_block_ref(x_nchw, w_oihw, bias, up_scale):
    r = up_scale
    y = lax.conv_general_dilated(
        x_nchw.astype(jnp.float32), w_oihw.astype(jnp.float32), (1, 1),
        [(1, 1), (1, 1)], dimension_numbers=("NCHW", "OIHW", "NCHW"),
        precision=lax.Precision.HIGHEST)
    y = y + bias.reshape(1, -1, 1, 1)
    n, c, h, w = y.shape
    cin = c // (r * r)
    # torch.nn.PixelShuffle
    y = y.reshape(n, cin, r, r, h, w).transpose(0, 1, 4, 2, 5, 3).reshape(n, cin, h * r, w * r)
    # mish with torch softplus threshold=20 semantics
    sp = jnp.where(y > 20.0, y, jnp.log1p(jnp.exp(jnp.minimum(y, 20.0))))
    return y * jnp.tanh(sp)


# ----------------------------------------------------------------------------- main

if __name__ == "__main__":
    N, C, H, W = 2, 4, 16, 16
    UP = 2
    key = jax.random.PRNGKey(0)
    kx, kw, kb = jax.random.split(key, 3)

    x = jax.random.normal(kx, (N, C, H, W), jnp.float32)
    cout = C * UP * UP
    fan_in = 9 * C
    wgt = jax.random.normal(kw, (cout, C, 3, 3), jnp.float32) / np.sqrt(fan_in)
    b = 0.1 * jax.random.normal(kb, (cout,), jnp.float32)

    out = jax.block_until_ready(upsample_block_forward(x, wgt, b, UP))
    ref = jax.block_until_ready(upsample_block_ref(x, wgt, b, UP))

    assert out.shape == (N, C, H * UP, W * UP)
    # bf16 matmul operands (f32 accumulation) -> loosened tolerance vs. the f32 reference.
    np.testing.assert_allclose(np.asarray(out), np.asarray(ref), atol=3e-2, rtol=3e-2)
    print("KERNEL_OK")
</pallas_src>

<mosaic_0001>
module attributes {stable_mosaic.version = 11 : i64} {
  func.func @_conv_bias_mish_kernel(%arg0: i32, %arg1: memref<1x4x326xbf16, #tpu.memory_space<vmem>>, %arg2: memref<9x16x4xbf16, #tpu.memory_space<vmem>>, %arg3: memref<16x1xf32, #tpu.memory_space<vmem>>, %arg4: memref<1x16x288xf32, #tpu.memory_space<vmem>>) attributes {dimension_semantics = [#tpu.dimension_semantics<parallel>], iteration_bounds = array<i64: 2>, scalar_prefetch = 0 : i64, scratch_operands = 0 : i64, tpu.core_type = #tpu.core_type<tc>, window_params = [{transform_indices = @transform_0, window_bounds = array<i64: 1, 4, 326>}, {pipeline_mode = #tpu.pipeline_mode<synchronous>, transform_indices = @transform_1, window_bounds = array<i64: 9, 16, 4>}, {pipeline_mode = #tpu.pipeline_mode<synchronous>, transform_indices = @transform_2, window_bounds = array<i64: 16, 1>}, {transform_indices = @transform_3, window_bounds = array<i64: 1, 16, 288>}]} {
    %cst = arith.constant 0.000000e+00 : f32
    %0 = vector.broadcast %cst : f32 to vector<16x288xf32>
    %c0 = arith.constant 0 : index
    %c0_0 = arith.constant 0 : index
    %c0_1 = arith.constant 0 : index
    %1 = vector.load %arg1[%c0, %c0_0, %c0_1] : memref<1x4x326xbf16, #tpu.memory_space<vmem>>, vector<1x4x288xbf16>
    %2 = vector.shape_cast %1 : vector<1x4x288xbf16> to vector<4x288xbf16>
    %c0_2 = arith.constant 0 : index
    %c0_3 = arith.constant 0 : index
    %c0_4 = arith.constant 0 : index
    %3 = vector.load %arg2[%c0_2, %c0_3, %c0_4] : memref<9x16x4xbf16, #tpu.memory_space<vmem>>, vector<1x16x4xbf16>
    %4 = vector.shape_cast %3 : vector<1x16x4xbf16> to vector<16x4xbf16>
    %cst_5 = arith.constant dense<0.000000e+00> : vector<16x288xf32>
    %5 = tpu.matmul %4, %2, %cst_5 {dimension_numbers = #tpu.dot_dimension_numbers<[1], [0], [0], [1], [0, 0, 1, 1], [], []>} : vector<16x4xbf16>, vector<4x288xbf16>, vector<16x288xf32> -> vector<16x288xf32>
    %6 = arith.addf %0, %5 : vector<16x288xf32>
    %c0_6 = arith.constant 0 : index
    %c0_7 = arith.constant 0 : index
    %c1 = arith.constant 1 : index
    %7 = vector.load %arg1[%c0_6, %c0_7, %c1] : memref<1x4x326xbf16, #tpu.memory_space<vmem>>, vector<1x4x288xbf16>
    %8 = vector.shape_cast %7 : vector<1x4x288xbf16> to vector<4x288xbf16>
    %c1_8 = arith.constant 1 : index
    %c0_9 = arith.constant 0 : index
    %c0_10 = arith.constant 0 : index
    %9 = vector.load %arg2[%c1_8, %c0_9, %c0_10] : memref<9x16x4xbf16, #tpu.memory_space<vmem>>, vector<1x16x4xbf16>
    %10 = vector.shape_cast %9 : vector<1x16x4xbf16> to vector<16x4xbf16>
    %cst_11 = arith.constant dense<0.000000e+00> : vector<16x288xf32>
    %11 = tpu.matmul %10, %8, %cst_11 {dimension_numbers = #tpu.dot_dimension_numbers<[1], [0], [0], [1], [0, 0, 1, 1], [], []>} : vector<16x4xbf16>, vector<4x288xbf16>, vector<16x288xf32> -> vector<16x288xf32>
    %12 = arith.addf %6, %11 : vector<16x288xf32>
    %c0_12 = arith.constant 0 : index
    %c0_13 = arith.constant 0 : index
    %c2 = arith.constant 2 : index
    %13 = vector.load %arg1[%c0_12, %c0_13, %c2] : memref<1x4x326xbf16, #tpu.memory_space<vmem>>, vector<1x4x288xbf16>
    %14 = vector.shape_cast %13 : vector<1x4x288xbf16> to vector<4x288xbf16>
    %c2_14 = arith.constant 2 : index
    %c0_15 = arith.constant 0 : index
    %c0_16 = arith.constant 0 : index
    %15 = vector.load %arg2[%c2_14, %c0_15, %c0_16] : memref<9x16x4xbf16, #tpu.memory_space<vmem>>, vector<1x16x4xbf16>
    %16 = vector.shape_cast %15 : vector<1x16x4xbf16> to vector<16x4xbf16>
    %cst_17 = arith.constant dense<0.000000e+00> : vector<16x288xf32>
    %17 = tpu.matmul %16, %14, %cst_17 {dimension_numbers = #tpu.dot_dimension_numbers<[1], [0], [0], [1], [0, 0, 1, 1], [], []>} : vector<16x4xbf16>, vector<4x288xbf16>, vector<16x288xf32> -> vector<16x288xf32>
    %18 = arith.addf %12, %17 : vector<16x288xf32>
    %c0_18 = arith.constant 0 : index
    %c0_19 = arith.constant 0 : index
    %c18 = arith.constant 18 : index
    %19 = vector.load %arg1[%c0_18, %c0_19, %c18] : memref<1x4x326xbf16, #tpu.memory_space<vmem>>, vector<1x4x288xbf16>
    %20 = vector.shape_cast %19 : vector<1x4x288xbf16> to vector<4x288xbf16>
    %c3 = arith.constant 3 : index
    %c0_20 = arith.constant 0 : index
    %c0_21 = arith.constant 0 : index
    %21 = vector.load %arg2[%c3, %c0_20, %c0_21] : memref<9x16x4xbf16, #tpu.memory_space<vmem>>, vector<1x16x4xbf16>
    %22 = vector.shape_cast %21 : vector<1x16x4xbf16> to vector<16x4xbf16>
    %cst_22 = arith.constant dense<0.000000e+00> : vector<16x288xf32>
    %23 = tpu.matmul %22, %20, %cst_22 {dimension_numbers = #tpu.dot_dimension_numbers<[1], [0], [0], [1], [0, 0, 1, 1], [], []>} : vector<16x4xbf16>, vector<4x288xbf16>, vector<16x288xf32> -> vector<16x288xf32>
    %24 = arith.addf %18, %23 : vector<16x288xf32>
    %c0_23 = arith.constant 0 : index
    %c0_24 = arith.constant 0 : index
    %c19 = arith.constant 19 : index
    %25 = vector.load %arg1[%c0_23, %c0_24, %c19] : memref<1x4x326xbf16, #tpu.memory_space<vmem>>, vector<1x4x288xbf16>
    %26 = vector.shape_cast %25 : vector<1x4x288xbf16> to vector<4x288xbf16>
    %c4 = arith.constant 4 : index
    %c0_25 = arith.constant 0 : index
    %c0_26 = arith.constant 0 : index
    %27 = vector.load %arg2[%c4, %c0_25, %c0_26] : memref<9x16x4xbf16, #tpu.memory_space<vmem>>, vector<1x16x4xbf16>
    %28 = vector.shape_cast %27 : vector<1x16x4xbf16> to vector<16x4xbf16>
    %cst_27 = arith.constant dense<0.000000e+00> : vector<16x288xf32>
    %29 = tpu.matmul %28, %26, %cst_27 {dimension_numbers = #tpu.dot_dimension_numbers<[1], [0], [0], [1], [0, 0, 1, 1], [], []>} : vector<16x4xbf16>, vector<4x288xbf16>, vector<16x288xf32> -> vector<16x288xf32>
    %30 = arith.addf %24, %29 : vector<16x288xf32>
    %c0_28 = arith.constant 0 : index
    %c0_29 = arith.constant 0 : index
    %c20 = arith.constant 20 : index
    %31 = vector.load %arg1[%c0_28, %c0_29, %c20] : memref<1x4x326xbf16, #tpu.memory_space<vmem>>, vector<1x4x288xbf16>
    %32 = vector.shape_cast %31 : vector<1x4x288xbf16> to vector<4x288xbf16>
    %c5 = arith.constant 5 : index
    %c0_30 = arith.constant 0 : index
    %c0_31 = arith.constant 0 : index
    %33 = vector.load %arg2[%c5, %c0_30, %c0_31] : memref<9x16x4xbf16, #tpu.memory_space<vmem>>, vector<1x16x4xbf16>
    %34 = vector.shape_cast %33 : vector<1x16x4xbf16> to vector<16x4xbf16>
    %cst_32 = arith.constant dense<0.000000e+00> : vector<16x288xf32>
    %35 = tpu.matmul %34, %32, %cst_32 {dimension_numbers = #tpu.dot_dimension_numbers<[1], [0], [0], [1], [0, 0, 1, 1], [], []>} : vector<16x4xbf16>, vector<4x288xbf16>, vector<16x288xf32> -> vector<16x288xf32>
    %36 = arith.addf %30, %35 : vector<16x288xf32>
    %c0_33 = arith.constant 0 : index
    %c0_34 = arith.constant 0 : index
    %c36 = arith.constant 36 : index
    %37 = vector.load %arg1[%c0_33, %c0_34, %c36] : memref<1x4x326xbf16, #tpu.memory_space<vmem>>, vector<1x4x288xbf16>
    %38 = vector.shape_cast %37 : vector<1x4x288xbf16> to vector<4x288xbf16>
    %c6 = arith.constant 6 : index
    %c0_35 = arith.constant 0 : index
    %c0_36 = arith.constant 0 : index
    %39 = vector.load %arg2[%c6, %c0_35, %c0_36] : memref<9x16x4xbf16, #tpu.memory_space<vmem>>, vector<1x16x4xbf16>
    %40 = vector.shape_cast %39 : vector<1x16x4xbf16> to vector<16x4xbf16>
    %cst_37 = arith.constant dense<0.000000e+00> : vector<16x288xf32>
    %41 = tpu.matmul %40, %38, %cst_37 {dimension_numbers = #tpu.dot_dimension_numbers<[1], [0], [0], [1], [0, 0, 1, 1], [], []>} : vector<16x4xbf16>, vector<4x288xbf16>, vector<16x288xf32> -> vector<16x288xf32>
    %42 = arith.addf %36, %41 : vector<16x288xf32>
    %c0_38 = arith.constant 0 : index
    %c0_39 = arith.constant 0 : index
    %c37 = arith.constant 37 : index
    %43 = vector.load %arg1[%c0_38, %c0_39, %c37] : memref<1x4x326xbf16, #tpu.memory_space<vmem>>, vector<1x4x288xbf16>
    %44 = vector.shape_cast %43 : vector<1x4x288xbf16> to vector<4x288xbf16>
    %c7 = arith.constant 7 : index
    %c0_40 = arith.constant 0 : index
    %c0_41 = arith.constant 0 : index
    %45 = vector.load %arg2[%c7, %c0_40, %c0_41] : memref<9x16x4xbf16, #tpu.memory_space<vmem>>, vector<1x16x4xbf16>
    %46 = vector.shape_cast %45 : vector<1x16x4xbf16> to vector<16x4xbf16>
    %cst_42 = arith.constant dense<0.000000e+00> : vector<16x288xf32>
    %47 = tpu.matmul %46, %44, %cst_42 {dimension_numbers = #tpu.dot_dimension_numbers<[1], [0], [0], [1], [0, 0, 1, 1], [], []>} : vector<16x4xbf16>, vector<4x288xbf16>, vector<16x288xf32> -> vector<16x288xf32>
    %48 = arith.addf %42, %47 : vector<16x288xf32>
    %c0_43 = arith.constant 0 : index
    %c0_44 = arith.constant 0 : index
    %c38 = arith.constant 38 : index
    %49 = vector.load %arg1[%c0_43, %c0_44, %c38] : memref<1x4x326xbf16, #tpu.memory_space<vmem>>, vector<1x4x288xbf16>
    %50 = vector.shape_cast %49 : vector<1x4x288xbf16> to vector<4x288xbf16>
    %c8 = arith.constant 8 : index
    %c0_45 = arith.constant 0 : index
    %c0_46 = arith.constant 0 : index
    %51 = vector.load %arg2[%c8, %c0_45, %c0_46] : memref<9x16x4xbf16, #tpu.memory_space<vmem>>, vector<1x16x4xbf16>
    %52 = vector.shape_cast %51 : vector<1x16x4xbf16> to vector<16x4xbf16>
    %cst_47 = arith.constant dense<0.000000e+00> : vector<16x288xf32>
    %53 = tpu.matmul %52, %50, %cst_47 {dimension_numbers = #tpu.dot_dimension_numbers<[1], [0], [0], [1], [0, 0, 1, 1], [], []>} : vector<16x4xbf16>, vector<4x288xbf16>, vector<16x288xf32> -> vector<16x288xf32>
    %54 = arith.addf %48, %53 : vector<16x288xf32>
    %c0_48 = arith.constant 0 : index
    %c0_49 = arith.constant 0 : index
    %55 = vector.load %arg3[%c0_48, %c0_49] : memref<16x1xf32, #tpu.memory_space<vmem>>, vector<16x1xf32>
    %56 = vector.broadcast %55 : vector<16x1xf32> to vector<16x288xf32>
    %57 = arith.addf %54, %56 : vector<16x288xf32>
    %cst_50 = arith.constant 2.000000e+01 : f32
    %58 = vector.broadcast %cst_50 : f32 to vector<16x288xf32>
    %59 = arith.minimumf %57, %58 : vector<16x288xf32>
    %60 = math.exp %59 : vector<16x288xf32>
    %cst_51 = arith.constant 2.000000e+00 : f32
    %61 = vector.broadcast %cst_51 : f32 to vector<16x288xf32>
    %62 = arith.addf %60, %61 : vector<16x288xf32>
    %63 = arith.mulf %60, %62 : vector<16x288xf32>
    %cst_52 = arith.constant 2.000000e+00 : f32
    %64 = vector.broadcast %cst_52 : f32 to vector<16x288xf32>
    %65 = arith.addf %63, %64 : vector<16x288xf32>
    %66 = tpu.reciprocal %65 {approx = true} : vector<16x288xf32> -> vector<16x288xf32>
    %67 = arith.mulf %65, %66 : vector<16x288xf32>
    %cst_53 = arith.constant 2.000000e+00 : f32
    %68 = vector.broadcast %cst_53 : f32 to vector<16x288xf32>
    %69 = arith.subf %68, %67 : vector<16x288xf32>
    %70 = arith.mulf %66, %69 : vector<16x288xf32>
    %cst_54 = arith.constant 2.000000e+01 : f32
    %71 = vector.broadcast %cst_54 : f32 to vector<16x288xf32>
    %72 = arith.cmpf ogt, %57, %71 : vector<16x288xf32>
    %73 = arith.mulf %57, %63 : vector<16x288xf32>
    %74 = arith.mulf %73, %70 : vector<16x288xf32>
    %75 = arith.select %72, %57, %74 : vector<16x288xi1>, vector<16x288xf32>
    %c0_55 = arith.constant 0 : index
    %c0_56 = arith.constant 0 : index
    %c0_57 = arith.constant 0 : index
    %76 = vector.load %arg4[%c0_55, %c0_56, %c0_57] : memref<1x16x288xf32, #tpu.memory_space<vmem>>, vector<1x16x288xf32>
    %77 = vector.shape_cast %76 : vector<1x16x288xf32> to vector<16x288xf32>
    %78 = vector.shape_cast %75 : vector<16x288xf32> to vector<1x16x288xf32>
    tpu.vector_store %arg4[%c0_55, %c0_56, %c0_57], %78 {strides = array<i32>} : memref<1x16x288xf32, #tpu.memory_space<vmem>>, vector<1x16x288xf32>,
    return
  }
  func.func @transform_0(%arg0: i32) -> (i32, i32, i32) {
    %c0_i32 = arith.constant 0 : i32
    %c0_i32_0 = arith.constant 0 : i32
    %c0_i32_1 = arith.constant 0 : i32
    return %arg0, %c0_i32, %c0_i32_0 : i32, i32, i32
  }
  func.func @transform_1(%arg0: i32) -> (i32, i32, i32) {
    %c0_i32 = arith.constant 0 : i32
    %c0_i32_0 = arith.constant 0 : i32
    %c0_i32_1 = arith.constant 0 : i32
    %c0_i32_2 = arith.constant 0 : i32
    return %c0_i32, %c0_i32_0, %c0_i32_1 : i32, i32, i32
  }
  func.func @transform_2(%arg0: i32) -> (i32, i32) {
    %c0_i32 = arith.constant 0 : i32
    %c0_i32_0 = arith.constant 0 : i32
    %c0_i32_1 = arith.constant 0 : i32
    return %c0_i32, %c0_i32_0 : i32, i32
  }
  func.func @transform_3(%arg0: i32) -> (i32, i32, i32) {
    %c0_i32 = arith.constant 0 : i32
    %c0_i32_0 = arith.constant 0 : i32
    %c0_i32_1 = arith.constant 0 : i32
    return %arg0, %c0_i32, %c0_i32_0 : i32, i32, i32
  }
}

</mosaic_0001>

<bundles_post_ra>
// kernel: upsample_block_forward.1
= control target key start
LH: loop header
LB: loop body
LE: loop exit
PB: predicated region body
PF: predicated region fallthrough
CT: control target
= control target key end

     0   :  { %s1261_s12 = smov 0   ;;  %s1438_s0 = inlined_call_operand.vmem [shape: bf16[2,4,326], index: 0, kind: input, shape index: {}]   ;;  %s1439_s1 = inlined_call_operand.vmem [shape: bf16[9,16,4], index: 1, kind: input, shape index: {}]   ;;  %s1440_s2 = inlined_call_operand.vmem [shape: f32[16,1], index: 2, kind: input, shape index: {}]   ;;  %s1441_s3 = inlined_call_operand.vmem [shape: f32[2,16,288], index: 3, kind: output, shape index: {}]  }
   0x1 LB: > { %s1082_s13 = sadd.s32 4294967295, %s1230_s12   ;;  %p1086_p0 = scmp.ge.s32.totalorder %s1230_s12, 1  ;;  %s1230_s12 = sphi %s1261_s12, %s13_s12  }
   0x2   : > { %p137_p1 = scmp.lt.s32.totalorder %s1230_s12, 3 }
   0x4   : > { %p138_p2 = pnand %p1086_p0, %p137_p1 }
   0x5   : > { %p161_p3 = scmp.lt.s32.totalorder (!%p138_p2), %s1082_s13, 1  ;;  %s1232_s18 = smov (!%p138_p2), 127  }
   0x6   : > { %141 = sbr.rel (%p138_p2) target bundleno = 421 (0x1a5), region = 32  ;;  %s1233_s19 = smov (!%p138_p2), 126  }
   0x7   : > { %s1234_s20 = smov (!%p138_p2), 110   ;;  %s1235_s21 = smov (!%p138_p2), 109  }
   0x8   : > { %s1236_s22 = smov (!%p138_p2), 108   ;;  %s1237_s23 = smov (!%p138_p2), 92  }
   0x9   : > { %s1238_s24 = smov (!%p138_p2), 91   ;;  %s1239_s25 = smov (!%p138_p2), 90  }
   0xb   : > { %s1443_s13 = smov (!%p161_p3, %s1082_s13), 1  ;;  %vm204_vm0 = vcmask 1041408   ;;  %v1170_v36 = vld [vmem:[%s1439_s1] sm:$0xff]  ;;  %vm200_vm1 = vcmask 31744   ;;  %vm197_vm2 = vcmask 1039360   ;;  %v1171_v42 = vld [vmem:[%s1439_s1 + $0x8] sm:$0xff] }
   0xc   : > { %s1179_s14 = smul.u32 6, %s1443_s13  ;;  %vm339_vm3 = vcmask 1031168   ;;  %v1172_v48 = vld [vmem:[%s1439_s1 + $0x10] sm:$0xff]  ;;  %vm425_vm4 = vcmask 900096   ;;  %vm511_vm5 = vcmask 891904   ;;  %vm597_vm6 = vcmask 883712  }
   0xd   : > { %vm683_vm7 = vcmask 752640   ;;  %vm769_vm8 = vcmask 744448   ;;  %vm855_vm9 = vcmask 736256   ;;  %vm1022_vm11 = vcmask 261120  }
   0xe   : > { %s1275_s17 = scalar_lea.vmem %s1438_s0, %s1179_s14 }
   0xf   : > { %v172_v0 = vld [vmem:[%s1275_s17] sm:$0x3f] }
  0x10   : > { %184 = vst [vmem:[#allocation1] ss:$4 sm:$0xff] %v172_v0  ;;  %v316_v4 = vld [vmem:[%s1275_s17] sm:$0x3f] }
  0x11   : > { %v402_v8 = vld [vmem:[%s1275_s17] sm:$0x3f] }
  0x12   : > { %v488_v12 = vld [vmem:[%s1275_s17] sm:$0x3f] }
  0x13   : > { %v574_v16 = vld [vmem:[%s1275_s17] sm:$0x3f] }
  0x14   : > { %v660_v20 = vld [vmem:[%s1275_s17] sm:$0x3f] }
  0x15   : > { %v746_v24 = vld [vmem:[%s1275_s17] sm:$0x3f] }
  0x16   : > { %v832_v28 = vld [vmem:[%s1275_s17] sm:$0x3f] }
  0x17   : > { %v189_v1 = vld.sshfl [vmem:[#allocation1 + $0x10] sm:$0xff pattern:$0x73625140]  ;;  %v187_v2 = vld.sshfl [vmem:[#allocation1 + $0x8] sm:$0xff pattern:$0x73625140] }
  0x18   : > { %195 = vrot.lane.b32.xlu0 %v189_v1, %s1232_s18  ;;  %193 = vrot.lane.b32.xlu1 %v187_v2, %s1232_s18  ;;  %v185_v3 = vld.sshfl [vmem:[#allocation1] sm:$0xff pattern:$0x73625140]  ;;  %v1173_v1 = vld [vmem:[%s1439_s1 + $0x18] sm:$0xff] }
  0x19   : > { %261 = vst [vmem:[#allocation1] ss:$4 sm:$0xff] %v172_v0 }
  0x20   : > { %191 = vrot.lane.b32.xlu0 %v185_v3, %s1232_s18  ;;  %v1279_v5 = vld.sshfl [vmem:[#allocation1] sm:$0xff pattern:$0x73625140]  ;;  %v1281_v6 = vld.sshfl [vmem:[#allocation1 + $0x8] sm:$0xff pattern:$0x73625140] }
  0x21   : > { %v1283_v7 = vld.sshfl [vmem:[#allocation1 + $0x10] sm:$0xff pattern:$0x73625140]  ;;  %v268_v35 = vsel %vm204_vm0, %v1279_v5, 0  ;;  %v270_v51 = vsel %vm204_vm0, %v1281_v6, 0 }
  0x22   : > { %326 = vst [vmem:[#allocation1] ss:$4 sm:$0xff] %v316_v4  ;;  %281 = vmatpush.bf16.msra.mxu3 %v268_v35  ;;  %v272_v43 = vsel %vm204_vm0, %v1283_v7, 0 }
  0x25   : > { %1102 = vmatmul.msk.bf16.vlgmr.msra.gmra.mxu3 %vm200_vm1, %v1170_v36 }
  0x29   : > { %v327_v9 = vld.sshfl [vmem:[#allocation1] sm:$0xff pattern:$0x73625140]  ;;  %v329_v10 = vld.sshfl [vmem:[#allocation1 + $0x8] sm:$0xff pattern:$0x73625140] }
  0x2a   : > { %333 = vrot.lane.b32.xlu1 %v327_v9, %s1233_s19  ;;  %335 = vrot.lane.b32.xlu2 %v329_v10, %s1233_s19  ;;  %v331_v11 = vld.sshfl [vmem:[#allocation1 + $0x10] sm:$0xff pattern:$0x73625140] }
  0x2b   : > { %412 = vst [vmem:[#allocation1] ss:$4 sm:$0xff] %v402_v8 }
  0x32   : > { %v417_v13 = vld.sshfl [vmem:[#allocation1 + $0x10] sm:$0xff pattern:$0x73625140]  ;;  %v413_v14 = vld.sshfl [vmem:[#allocation1] sm:$0xff pattern:$0x73625140]  ;;  %337 = vrot.lane.b32.xlu2 %v331_v11, %s1233_s19 }
  0x33   : > { %423 = vrot.lane.b32.xlu1 %v417_v13, %s1234_s20  ;;  %v415_v15 = vld.sshfl [vmem:[#allocation1 + $0x8] sm:$0xff pattern:$0x73625140] }
  0x34   : > { %421 = vrot.lane.b32.xlu0 %v415_v15, %s1234_s20  ;;  %498 = vst [vmem:[#allocation1] ss:$4 sm:$0xff] %v488_v12  ;;  %v1175_v15 = vld [vmem:[%s1439_s1 + $0x28] sm:$0xff] }
  0x3a   : > { %419 = vrot.lane.b32.xlu2 %v413_v14, %s1234_s20 }
  0x3b   : > { %v503_v17 = vld.sshfl [vmem:[#allocation1 + $0x10] sm:$0xff pattern:$0x73625140]  ;;  %v501_v18 = vld.sshfl [vmem:[#allocation1 + $0x8] sm:$0xff pattern:$0x73625140] }
  0x3c   : > { %509 = vrot.lane.b32.xlu0 %v503_v17, %s1235_s21  ;;  %v499_v19 = vld.sshfl [vmem:[#allocation1] sm:$0xff pattern:$0x73625140] }
  0x3d   : > { %505 = vrot.lane.b32.xlu1 %v499_v19, %s1235_s21  ;;  %584 = vst [vmem:[#allocation1] ss:$4 sm:$0xff] %v574_v16  ;;  %v1174_v16 = vld [vmem:[%s1439_s1 + $0x20] sm:$0xff] }
  0x42   : > { %507 = vrot.lane.b32.xlu2 %v501_v18, %s1235_s21 }
  0x44   : > { %v587_v21 = vld.sshfl [vmem:[#allocation1 + $0x8] sm:$0xff pattern:$0x73625140]  ;;  %v585_v22 = vld.sshfl [vmem:[#allocation1] sm:$0xff pattern:$0x73625140] }
  0x45   : > { %593 = vrot.lane.b32.xlu1 %v587_v21, %s1236_s22  ;;  %591 = vrot.lane.b32.xlu0 %v585_v22, %s1236_s22  ;;  %v589_v23 = vld.sshfl [vmem:[#allocation1 + $0x10] sm:$0xff pattern:$0x73625140] }
  0x46   : > { %670 = vst [vmem:[#allocation1] ss:$4 sm:$0xff] %v660_v20 }
  0x4d   : > { %595 = vrot.lane.b32.xlu1 %v589_v23, %s1236_s22  ;;  %v675_v25 = vld.sshfl [vmem:[#allocation1 + $0x10] sm:$0xff pattern:$0x73625140]  ;;  %v673_v26 = vld.sshfl [vmem:[#allocation1 + $0x8] sm:$0xff pattern:$0x73625140] }
  0x4e   : > { %679 = vrot.lane.b32.xlu0 %v673_v26, %s1237_s23  ;;  %v671_v27 = vld.sshfl [vmem:[#allocation1] sm:$0xff pattern:$0x73625140] }
  0x4f   : > { %677 = vrot.lane.b32.xlu2 %v671_v27, %s1237_s23  ;;  %756 = vst [vmem:[#allocation1] ss:$4 sm:$0xff] %v746_v24 }
  0x56   : > { %v757_v29 = vld.sshfl [vmem:[#allocation1] sm:$0xff pattern:$0x73625140]  ;;  %v761_v30 = vld.sshfl [vmem:[#allocation1 + $0x10] sm:$0xff pattern:$0x73625140] }
  0x57   : > { %767 = vrot.lane.b32.xlu1 %v761_v30, %s1238_s24  ;;  %v759_v31 = vld.sshfl [vmem:[#allocation1 + $0x8] sm:$0xff pattern:$0x73625140]  ;;  %681 = vrot.lane.b32.xlu2 %v675_v25, %s1237_s23  ;;  %s1180_s23 = smul.u32 48, %s1443_s13 }
  0x58   : > { %765 = vrot.lane.b32.xlu0 %v759_v31, %s1238_s24  ;;  %842 = vst [vmem:[#allocation1] ss:$4 sm:$0xff] %v832_v28 }
  0x59   : > { %s1408_s26 = scalar_lea.vmem %s1441_s3, %s1180_s23 }
  0x5f   : > { %v847_v32 = vld.sshfl [vmem:[#allocation1 + $0x10] sm:$0xff pattern:$0x73625140]  ;;  %v843_v33 = vld.sshfl [vmem:[#allocation1] sm:$0xff pattern:$0x73625140]  ;;  %763 = vrot.lane.b32.xlu2 %v757_v29, %s1238_s24 }
  0x60   : > { %853 = vrot.lane.b32.xlu0 %v847_v32, %s1239_s25  ;;  %849 = vrot.lane.b32.xlu1 %v843_v33, %s1239_s25  ;;  %v845_v34 = vld.sshfl [vmem:[#allocation1 + $0x8] sm:$0xff pattern:$0x73625140]  ;;  %v1176_v32 = vld [vmem:[%s1439_s1 + $0x30] sm:$0xff] }
  0x67   : > { %851 = vrot.lane.b32.xlu2 %v845_v34, %s1239_s25 }
  0x84   : > { %v336_v37 = vpop.permute.xlu2 %335 }
  0x8a   : > { %v196_v38 = vpop.permute.xlu0 %195  ;;  %v194_v39 = vpop.permute.xlu1 %193 }
  0x8b   : > { %v199_v40 = vsel %vm197_vm2, %v194_v39, %v196_v38  ;;  %v212_v41 = vsel %vm204_vm0, %v196_v38, 0 }
  0x8c   : > { %v209_v44 = vsel %vm204_vm0, %v199_v40, 0  ;;  %249 = vmatpush.bf16.msra.mxu2 %v212_v41  ;;  %v338_v45 = vpop.permute.xlu2 %337 }
  0x8d   : > { %235 = vmatpush.bf16.msra.mxu1 %v209_v44  ;;  %v341_v46 = vsel %vm339_vm3, %v336_v37, %v338_v45  ;;  %v352_v53 = vsel %vm204_vm0, %v338_v45, 0  ;;  %v918_v45 = vld [vmem:[%s1440_s2] sm:$0xff] }
  0x8e   : > { %v349_v47 = vsel %vm204_vm0, %v341_v46, 0  ;;  %v919_v46 = vld [vmem:[%s1440_s2 + $0x8] sm:$0xff] }
  0x8f   : > { %1097 = vmatmul.msk.bf16.vlgmr.msra.gmra.mxu2 %vm200_vm1, %v1171_v42  ;;  %375 = vmatpush.bf16.msrb.mxu3 %v349_v47  ;;  %v1240_v47 = vmov 0  }
  0x90   : > { %1096 = vmatmul.msk.bf16.vlgmr.msra.gmra.mxu1 %vm200_vm1, %v1171_v42  ;;  %1198 = vset.pattern.permute.xlu0 %v1240_v47 }
  0x91   : > { %309 = vmatpush.bf16.msrb.mxu1 %v272_v43  ;;  %922 = vperm.xlu0 %1198, %v918_v45  }
  0x92   : > { %v192_v49 = vpop.permute.xlu0 %191  ;;  %1112 = vmatmul.msk.bf16.vlgmr.msrb.gmra.mxu3 %vm200_vm1, %v1172_v48  ;;  %1199 = vset.pattern.permute.xlu1 %v1240_v47 }
  0x93   : > { %v198_v50 = vsel %vm197_vm2, %v192_v49, %v194_v39  ;;  %927 = vperm.xlu1 %1199, %v919_v46   ;;  %v1178_v49 = vld [vmem:[%s1439_s1 + $0x40] sm:$0xff] }
  0x94   : > { %v206_v52 = vsel %vm204_vm0, %v198_v50, 0  ;;  %v420_v57 = vpop.permute.xlu2 %419 }
  0x95   : > { %221 = vmatpush.bf16.msra.mxu0 %v206_v52 }
  0x98   : > { %1095 = vmatmul.msk.bf16.vlgmr.msra.gmra.mxu0 %vm200_vm1, %v1171_v42 }
  0x99   : > { %295 = vmatpush.bf16.msrb.mxu0 %v270_v51 }
  0x9c   : > { %v334_v54 = vpop.permute.xlu1 %333  ;;  %v508_v2 = vpop.permute.xlu2 %507 }
  0x9d   : > { %389 = vmatpush.bf16.msra.mxu0 %v352_v53  ;;  %v340_v55 = vsel %vm339_vm3, %v334_v54, %v336_v37 }
  0x9e   : > { %v346_v56 = vsel %vm204_vm0, %v340_v55, 0 }
  0x9f   : > { %361 = vmatpush.bf16.msrb.mxu2 %v346_v56 }
  0xa0   : > { %1104 = vmatmul.msk.bf16.vlgmr.msrb.gmra.mxu1 %vm200_vm1, %v1170_v36 }
  0xa2   : > { %1111 = vmatmul.msk.bf16.vlgmr.msrb.gmra.mxu2 %vm200_vm1, %v1172_v48 }
  0xa5   : > { %v424_v58 = vpop.permute.xlu1 %423 }
  0xa6   : > { %v438_v59 = vsel %vm204_vm0, %v424_v58, 0  ;;  %v422_v60 = vpop.permute.xlu0 %421 }
  0xa7   : > { %v427_v61 = vsel %vm425_vm4, %v422_v60, %v424_v58  ;;  %v426_v62 = vsel %vm425_vm4, %v420_v57, %v422_v60  ;;  %475 = vmatpush.bf16.msra.mxu3 %v438_v59 }
  0xa8   : > { %1103 = vmatmul.msk.bf16.vlgmr.msrb.gmra.mxu0 %vm200_vm1, %v1170_v36  ;;  %v435_v63 = vsel %vm204_vm0, %v427_v61, 0  ;;  %v432_v0 = vsel %vm204_vm0, %v426_v62, 0  ;;  %v283_v50 = vpop.f32.mrf.mxu3 }
  0xa9   : > { %447 = vmatpush.bf16.msra.mxu1 %v432_v0  ;;  %461 = vmatpush.bf16.msra.mxu2 %v435_v63  ;;  %v678_v10 = vpop.permute.xlu2 %677 }
  0xaa   : > { %1122 = vmatmul.msk.bf16.vlgmr.msra.gmra.mxu3 %vm200_vm1, %v1173_v1 }
  0xae   : > { %v510_v3 = vpop.permute.xlu0 %509 }
  0xaf   : > { %v524_v4 = vsel %vm204_vm0, %v510_v3, 0  ;;  %v506_v5 = vpop.permute.xlu1 %505  ;;  %v513_v6 = vsel %vm511_vm5, %v508_v2, %v510_v3 }
  0xb0   : > { %1120 = vmatmul.msk.bf16.vlgmr.msra.gmra.mxu1 %vm200_vm1, %v1173_v1  ;;  %v512_v7 = vsel %vm511_vm5, %v506_v5, %v508_v2  ;;  %v521_v8 = vsel %vm204_vm0, %v513_v6, 0  ;;  %561 = vmatpush.bf16.msrb.mxu2 %v524_v4  ;;  %v285_v56 = vpop.f32.mrf.mxu3 }
  0xb1   : > { %v518_v9 = vsel %vm204_vm0, %v512_v7, 0  ;;  %547 = vmatpush.bf16.msrb.mxu1 %v521_v8  ;;  %v682_v17 = vpop.permute.xlu2 %681 }
  0xb2   : > { %1121 = vmatmul.msk.bf16.vlgmr.msra.gmra.mxu2 %vm200_vm1, %v1173_v1  ;;  %533 = vmatpush.bf16.msrb.mxu0 %v518_v9  ;;  %v696_v27 = vsel %vm204_vm0, %v682_v17, 0 }
  0xb7   : > { %v594_v11 = vpop.permute.xlu1 %593  ;;  %v592_v12 = vpop.permute.xlu0 %591 }
  0xb8   : > { %1113 = vmatmul.msk.bf16.vlgmr.msra.gmra.mxu0 %vm200_vm1, %v1172_v48  ;;  %v598_v13 = vsel %vm597_vm6, %v592_v12, %v594_v11  ;;  %v1177_v48 = vld [vmem:[%s1439_s1 + $0x38] sm:$0xff] }
  0xb9   : > { %v604_v14 = vsel %vm204_vm0, %v598_v13, 0  ;;  %v764_v28 = vpop.permute.xlu2 %763 }
  0xba   : > { %619 = vmatpush.bf16.msrb.mxu3 %v604_v14 }
  0xbd   : > { %1138 = vmatmul.msk.bf16.vlgmr.msrb.gmra.mxu3 %vm200_vm1, %v1175_v15 }
  0xbf   : > { %v596_v18 = vpop.permute.xlu1 %595 }
  0xc0   : > { %1130 = vmatmul.msk.bf16.vlgmr.msrb.gmra.mxu1 %vm200_vm1, %v1174_v16  ;;  %v599_v19 = vsel %vm597_vm6, %v594_v11, %v596_v18  ;;  %v610_v20 = vsel %vm204_vm0, %v596_v18, 0  ;;  %v680_v21 = vpop.permute.xlu0 %679 }
  0xc1   : > { %v607_v22 = vsel %vm204_vm0, %v599_v19, 0  ;;  %v684_v23 = vsel %vm683_vm7, %v678_v10, %v680_v21  ;;  %v685_v24 = vsel %vm683_vm7, %v680_v21, %v682_v17  ;;  %647 = vmatpush.bf16.msra.mxu1 %v610_v20  ;;  %v852_v37 = vpop.permute.xlu2 %851 }
  0xc2   : > { %1131 = vmatmul.msk.bf16.vlgmr.msrb.gmra.mxu2 %vm200_vm1, %v1174_v16  ;;  %v690_v25 = vsel %vm204_vm0, %v684_v23, 0  ;;  %v693_v26 = vsel %vm204_vm0, %v685_v24, 0  ;;  %633 = vmatpush.bf16.msra.mxu0 %v607_v22 }
  0xc3   : > { %705 = vmatpush.bf16.msra.mxu2 %v690_v25  ;;  %719 = vmatpush.bf16.msra.mxu3 %v693_v26 }
  0xc8   : > { %1129 = vmatmul.msk.bf16.vlgmr.msrb.gmra.mxu0 %vm200_vm1, %v1174_v16 }
  0xc9   : > { %733 = vmatpush.bf16.msrb.mxu0 %v696_v27  ;;  %v768_v29 = vpop.permute.xlu1 %767 }
  0xca   : > { %v782_v30 = vsel %vm204_vm0, %v768_v29, 0  ;;  %v766_v31 = vpop.permute.xlu0 %765 }
  0xcb   : > { %v771_v33 = vsel %vm769_vm8, %v766_v31, %v768_v29  ;;  %v770_v34 = vsel %vm769_vm8, %v764_v28, %v766_v31  ;;  %819 = vmatpush.bf16.msrb.mxu3 %v782_v30 }
  0xcc   : > { %v779_v35 = vsel %vm204_vm0, %v771_v33, 0  ;;  %v776_v36 = vsel %vm204_vm0, %v770_v34, 0 }
  0xcd   : > { %1148 = vmatmul.msk.bf16.vlgmr.msra.gmra.mxu3 %vm200_vm1, %v1176_v32  ;;  %791 = vmatpush.bf16.msrb.mxu1 %v776_v36 }
  0xce   : > { %805 = vmatpush.bf16.msrb.mxu2 %v779_v35 }
  0xd0   : > { %1140 = vmatmul.msk.bf16.vlgmr.msra.gmra.mxu1 %vm200_vm1, %v1175_v15 }
  0xd2   : > { %1147 = vmatmul.msk.bf16.vlgmr.msra.gmra.mxu2 %vm200_vm1, %v1176_v32  ;;  %v854_v38 = vpop.permute.xlu0 %853  ;;  %v850_v39 = vpop.permute.xlu1 %849 }
  0xd3   : > { %v868_v40 = vsel %vm204_vm0, %v854_v38, 0  ;;  %v857_v41 = vsel %vm855_vm9, %v852_v37, %v854_v38  ;;  %v856_v42 = vsel %vm855_vm9, %v850_v39, %v852_v37 }
  0xd4   : > { %v865_v43 = vsel %vm204_vm0, %v857_v41, 0  ;;  %905 = vmatpush.bf16.msra.mxu2 %v868_v40  ;;  %v862_v44 = vsel %vm204_vm0, %v856_v42, 0 }
  0xd5   : > { %891 = vmatpush.bf16.msra.mxu1 %v865_v43 }
  0xd8   : > { %1139 = vmatmul.msk.bf16.vlgmr.msra.gmra.mxu0 %vm200_vm1, %v1175_v15 }
  0xd9   : > { %877 = vmatpush.bf16.msra.mxu0 %v862_v44 }
  0xdd   : > { %1158 = vmatmul.msk.bf16.vlgmr.msrb.gmra.mxu3 %vm200_vm1, %v1177_v48 }
  0xe0   : > { %1156 = vmatmul.msk.bf16.vlgmr.msrb.gmra.mxu1 %vm200_vm1, %v1177_v48 }
  0xe2   : > { %1157 = vmatmul.msk.bf16.vlgmr.msrb.gmra.mxu2 %vm200_vm1, %v1177_v48 }
  0xe8   : > { %1149 = vmatmul.msk.bf16.vlgmr.msrb.gmra.mxu0 %vm200_vm1, %v1176_v32 }
  0xf0   : > { %1166 = vmatmul.msk.bf16.vlgmr.msra.gmra.mxu1 %vm200_vm1, %v1178_v49 }
  0xf2   : > { %1167 = vmatmul.msk.bf16.vlgmr.msra.gmra.mxu2 %vm200_vm1, %v1178_v49 }
  0xf8   : > { %1165 = vmatmul.msk.bf16.vlgmr.msra.gmra.mxu0 %vm200_vm1, %v1178_v49 }
 0x10d   : > { %v237_v51 = vpop.f32.mrf.mxu1 }
 0x112   : > { %v251_v52 = vpop.f32.mrf.mxu2 }
 0x115   : > { %v223_v53 = vpop.f32.mrf.mxu0  ;;  %v239_v54 = vpop.f32.mrf.mxu1 }
 0x116   : > { %v284_v55 = vadd.f32 %v283_v50, %v223_v53  ;;  %v377_v62 = vpop.f32.mrf.mxu3 }
 0x11a   : > { %v253_v57 = vpop.f32.mrf.mxu2 }
 0x11d   : > { %v225_v58 = vpop.f32.mrf.mxu0  ;;  %v311_v59 = vpop.f32.mrf.mxu1 }
 0x11e   : > { %v312_v60 = vadd.f32 %v311_v59, %v251_v52  ;;  %v286_v61 = vadd.f32 %v285_v56, %v225_v58  ;;  %v379_v4 = vpop.f32.mrf.mxu3 }
 0x125   : > { %v363_v63 = vpop.f32.mrf.mxu2  ;;  %v297_v0 = vpop.f32.mrf.mxu0 }
 0x126   : > { %v396_v1 = vadd.f32 %v363_v63, %v284_v55  ;;  %v313_v2 = vpop.f32.mrf.mxu1  ;;  %v298_v29 = vadd.f32 %v297_v0, %v237_v51 }
 0x127   : > { %v314_v3 = vadd.f32 %v313_v2, %v253_v57  ;;  %v923_v57 = vpop.permute.xlu0 %922 }
 0x128   : > { %v397_v33 = vadd.f32 %v377_v62, %v298_v29 }
 0x12d   : > { %v365_v5 = vpop.f32.mrf.mxu2  ;;  %v299_v6 = vpop.f32.mrf.mxu0 }
 0x12e   : > { %v399_v7 = vadd.f32 %v365_v5, %v286_v61  ;;  %v449_v8 = vpop.f32.mrf.mxu1  ;;  %v477_v9 = vpop.f32.mrf.mxu3  ;;  %v300_v36 = vadd.f32 %v299_v6, %v239_v54 }
 0x12f   : > { %v482_v44 = vadd.f32 %v449_v8, %v396_v1 }
 0x130   : > { %v400_v43 = vadd.f32 %v379_v4, %v300_v36 }
 0x135   : > { %v463_v10 = vpop.f32.mrf.mxu2  ;;  %v391_v11 = vpop.f32.mrf.mxu0 }
 0x136   : > { %v451_v12 = vpop.f32.mrf.mxu1  ;;  %v479_v13 = vpop.f32.mrf.mxu3  ;;  %v483_v34 = vadd.f32 %v463_v10, %v397_v33  ;;  %v398_v40 = vadd.f32 %v391_v11, %v312_v60 }
 0x137   : > { %v485_v0 = vadd.f32 %v451_v12, %v399_v7 }
 0x138   : > { %v484_v45 = vadd.f32 %v477_v9, %v398_v40 }
 0x13d   : > { %v465_v14 = vpop.f32.mrf.mxu2  ;;  %v393_v15 = vpop.f32.mrf.mxu0 }
 0x13e   : > { %v549_v16 = vpop.f32.mrf.mxu1  ;;  %v486_v46 = vadd.f32 %v465_v14, %v400_v43  ;;  %v401_v55 = vadd.f32 %v393_v15, %v314_v3 }
 0x13f   : > { %v569_v37 = vadd.f32 %v549_v16, %v483_v34 }
 0x140   : > { %v621_v20 = vpop.f32.mrf.mxu3  ;;  %v487_v1 = vadd.f32 %v479_v13, %v401_v55 }
 0x145   : > { %v563_v17 = vpop.f32.mrf.mxu2  ;;  %v535_v18 = vpop.f32.mrf.mxu0 }
 0x146   : > { %v551_v19 = vpop.f32.mrf.mxu1  ;;  %v570_v48 = vadd.f32 %v563_v17, %v484_v45  ;;  %v568_v49 = vadd.f32 %v535_v18, %v482_v44 }
 0x147   : > { %v572_v50 = vadd.f32 %v551_v19, %v486_v46 }
 0x148   : > { %v623_v24 = vpop.f32.mrf.mxu3  ;;  %v654_v61 = vadd.f32 %v621_v20, %v568_v49  ;;  %v928_v20 = vpop.permute.xlu1 %927 }
 0x14d   : > { %v565_v21 = vpop.f32.mrf.mxu2  ;;  %v537_v22 = vpop.f32.mrf.mxu0 }
 0x14e   : > { %v649_v23 = vpop.f32.mrf.mxu1  ;;  %v573_v6 = vadd.f32 %v565_v21, %v487_v1  ;;  %v571_v8 = vadd.f32 %v537_v22, %v485_v0 }
 0x14f   : > { %v656_v56 = vadd.f32 %v649_v23, %v570_v48 }
 0x150   : > { %v721_v28 = vpop.f32.mrf.mxu3  ;;  %v657_v12 = vadd.f32 %v623_v24, %v571_v8 }
 0x155   : > { %v707_v25 = vpop.f32.mrf.mxu2  ;;  %v635_v26 = vpop.f32.mrf.mxu0 }
 0x156   : > { %v651_v27 = vpop.f32.mrf.mxu1  ;;  %v655_v42 = vadd.f32 %v635_v26, %v569_v37  ;;  %v740_v2 = vadd.f32 %v707_v25, %v654_v61 }
 0x157   : > { %v659_v16 = vadd.f32 %v651_v27, %v573_v6 }
 0x158   : > { %v723_v35 = vpop.f32.mrf.mxu3  ;;  %v741_v47 = vadd.f32 %v721_v28, %v655_v42 }
 0x15d   : > { %v709_v30 = vpop.f32.mrf.mxu2  ;;  %v637_v31 = vpop.f32.mrf.mxu0 }
 0x15e   : > { %v793_v32 = vpop.f32.mrf.mxu1  ;;  %v658_v58 = vadd.f32 %v637_v31, %v572_v50  ;;  %v743_v26 = vadd.f32 %v709_v30, %v657_v12 }
 0x15f   : > { %v826_v9 = vadd.f32 %v793_v32, %v740_v2 }
 0x160   : > { %v821_v59 = vpop.f32.mrf.mxu3  ;;  %v744_v4 = vadd.f32 %v723_v35, %v658_v58 }
 0x165   : > { %v807_v38 = vpop.f32.mrf.mxu2  ;;  %v735_v39 = vpop.f32.mrf.mxu0 }
 0x166   : > { %v795_v41 = vpop.f32.mrf.mxu1  ;;  %v827_v51 = vadd.f32 %v807_v38, %v741_v47  ;;  %v742_v62 = vadd.f32 %v735_v39, %v656_v56 }
 0x167   : > { %v829_v31 = vadd.f32 %v795_v41, %v743_v26 }
 0x168   : > { %v828_v3 = vadd.f32 %v821_v59, %v742_v62  ;;  %v823_v21 = vpop.f32.mrf.mxu3 }
 0x16d   : > { %v809_v52 = vpop.f32.mrf.mxu2  ;;  %v737_v53 = vpop.f32.mrf.mxu0 }
 0x16e   : > { %v893_v54 = vpop.f32.mrf.mxu1  ;;  %v830_v10 = vadd.f32 %v809_v52, %v744_v4  ;;  %v745_v13 = vadd.f32 %v737_v53, %v659_v16 }
 0x16f   : > { %v913_v60 = vadd.f32 %v893_v54, %v827_v51 }
 0x170   : > { %v831_v32 = vadd.f32 %v823_v21, %v745_v13 }
 0x171   : > { %v1385_v63 = vadd.f32 %v923_v57, %v913_v60 }
 0x173   : > { %v937_v5 = vmin.f32 %v1385_v63, 20.0  ;;  %vm997_vm10 = vcmp.gt.f32.partialorder %v1385_v63, 20.0 }
 0x175   : > { %v944_v11 = vmul.f32 1.442695, %v937_v5  ;;  %v907_v14 = vpop.f32.mrf.mxu2  ;;  %v879_v15 = vpop.f32.mrf.mxu0 }
 0x176   : > { %v914_v17 = vadd.f32 %v907_v14, %v828_v3  ;;  %v912_v18 = vadd.f32 %v879_v15, %v826_v9  ;;  %v895_v19 = vpop.f32.mrf.mxu1 }
 0x177   : > { %1200 = vpow2.f32 %v944_v11  ;;  %v916_v7 = vadd.f32 %v895_v19, %v830_v10 }
 0x178   : > { %v1388_v23 = vadd.f32 %v923_v57, %v914_v17  ;;  %v1390_v25 = vadd.f32 %v923_v57, %v912_v18 }
 0x179   : > { %v1392_v22 = vadd.f32 %v928_v20, %v916_v7 }
 0x17a   : > { %v938_v28 = vmin.f32 %v1388_v23, 20.0  ;;  %v936_v27 = vmin.f32 %v1390_v25, 20.0  ;;  %vm998_vm12 = vcmp.gt.f32.partialorder %v1388_v23, 20.0  ;;  %vm996_vm13 = vcmp.gt.f32.partialorder %v1390_v25, 20.0 }
 0x17b   : > { %v940_v29 = vmin.f32 %v1392_v22, 20.0  ;;  %vm1000_vm14 = vcmp.gt.f32.partialorder %v1392_v22, 20.0 }
 0x17c   : > { %v946_v33 = vmul.f32 1.442695, %v938_v28  ;;  %v942_v34 = vmul.f32 1.442695, %v936_v27 }
 0x17d   : > { %v1201_v24 = vpop.eup %1200  ;;  %v950_v35 = vmul.f32 1.442695, %v940_v29  ;;  %v909_v36 = vpop.f32.mrf.mxu2 }
 0x17e   : > { %v881_v37 = vpop.f32.mrf.mxu0  ;;  %v955_v38 = vadd.f32 2.0, %v1201_v24  ;;  %1202 = vpow2.f32 %v946_v33  ;;  %v917_v39 = vadd.f32 %v909_v36, %v831_v32 }
 0x17f   : > { %v915_v40 = vadd.f32 %v881_v37, %v829_v31  ;;  %1204 = vpow2.f32 %v942_v34 }
 0x180   : > { %v961_v30 = vmul.f32 %v1201_v24, %v955_v38  ;;  %1206 = vpow2.f32 %v950_v35  ;;  %v1397_v42 = vadd.f32 %v928_v20, %v917_v39 }
 0x181   : > { %v1399_v43 = vadd.f32 %v928_v20, %v915_v40 }
 0x182   : > { %v967_v44 = vadd.f32 2.0, %v961_v30  ;;  %v941_v41 = vmin.f32 %v1397_v42, 20.0  ;;  %v1003_v6 = vmul.f32 %v961_v30, %v1385_v63  ;;  %vm1001_vm15 = vcmp.gt.f32.partialorder %v1397_v42, 20.0 }
 0x183   : > { %v939_v45 = vmin.f32 %v1399_v43, 20.0  ;;  %vm999_vm0 = vcmp.gt.f32.partialorder %v1399_v43, 20.0 }
 0x184   : > { %v1203_v46 = vpop.eup %1202  ;;  %1208 = vrcp.f32 %v967_v44  ;;  %v952_v47 = vmul.f32 1.442695, %v941_v41 }
 0x185   : > { %v1205_v48 = vpop.eup %1204  ;;  %v956_v49 = vadd.f32 2.0, %v1203_v46  ;;  %v948_v50 = vmul.f32 1.442695, %v939_v45 }
 0x186   : > { %v1207_v51 = vpop.eup %1206  ;;  %v954_v52 = vadd.f32 2.0, %v1205_v48  ;;  %1210 = vpow2.f32 %v952_v47 }
 0x187   : > { %v962_v53 = vmul.f32 %v1203_v46, %v956_v49  ;;  %v958_v55 = vadd.f32 2.0, %v1207_v51  ;;  %1212 = vpow2.f32 %v948_v50 }
 0x188   : > { %v960_v56 = vmul.f32 %v1205_v48, %v954_v52 }
 0x189   : > { %v968_v54 = vadd.f32 2.0, %v962_v53  ;;  %v964_v57 = vmul.f32 %v1207_v51, %v958_v55  ;;  %v1004_v21 = vmul.f32 %v962_v53, %v1388_v23 }
 0x18a   : > { %v1209_v58 = vpop.eup %1208  ;;  %v966_v59 = vadd.f32 2.0, %v960_v56  ;;  %v1002_v27 = vmul.f32 %v960_v56, %v1390_v25 }
 0x18b   : > { %v979_v60 = vmul.f32 %v1209_v58, %v967_v44  ;;  %1214 = vrcp.f32 %v968_v54  ;;  %v970_v61 = vadd.f32 2.0, %v964_v57 }
 0x18c   : > { %v1211_v62 = vpop.eup %1210  ;;  %1216 = vrcp.f32 %v966_v59 }
 0x18d   : > { %v1213_v0 = vpop.eup %1212  ;;  %v985_v1 = vsub.f32 2.0, %v979_v60  ;;  %1218 = vrcp.f32 %v970_v61  ;;  %v959_v2 = vadd.f32 2.0, %v1211_v62 }
 0x18e   : > { %v957_v4 = vadd.f32 2.0, %v1213_v0 }
 0x18f   : > { %v991_v5 = vmul.f32 %v1209_v58, %v985_v1  ;;  %v965_v8 = vmul.f32 %v1211_v62, %v959_v2 }
 0x190   : > { %v963_v9 = vmul.f32 %v1213_v0, %v957_v4 }
 0x191   : > { %v1215_v3 = vpop.eup %1214  ;;  %v1009_v10 = vmul.f32 %v1003_v6, %v991_v5  ;;  %v971_v11 = vadd.f32 2.0, %v965_v8  ;;  %v1007_v44 = vmul.f32 %v965_v8, %v1397_v42 }
 0x192   : > { %v1217_v14 = vpop.eup %1216  ;;  %v980_v15 = vmul.f32 %v1215_v3, %v968_v54  ;;  %v969_v16 = vadd.f32 2.0, %v963_v9  ;;  %v1005_v45 = vmul.f32 %v963_v9, %v1399_v43 }
 0x193   : > { %v1219_v17 = vpop.eup %1218  ;;  %v1015_v18 = vsel %vm997_vm10, %v1385_v63, %v1009_v10  ;;  %v978_v19 = vmul.f32 %v1217_v14, %v966_v59  ;;  %1220 = vrcp.f32 %v971_v11  ;;  %v1006_v63 = vmul.f32 %v964_v57, %v1392_v22 }
 0x194   : > { %1021 = vst [vmem:[%s1408_s26 + $0x8] sm:$0xff] %v1015_v18  ;;  %v986_v20 = vsub.f32 2.0, %v980_v15  ;;  %v982_v7 = vmul.f32 %v1219_v17, %v970_v61  ;;  %1222 = vrcp.f32 %v969_v16 }
 0x195   : > { %v984_v12 = vsub.f32 2.0, %v978_v19 }
 0x196   : > { %v992_v13 = vmul.f32 %v1215_v3, %v986_v20  ;;  %v988_v26 = vsub.f32 2.0, %v982_v7 }
 0x197   : > { %v990_v28 = vmul.f32 %v1217_v14, %v984_v12 }
 0x198   : > { %v1010_v29 = vmul.f32 %v1004_v21, %v992_v13  ;;  %v994_v31 = vmul.f32 %v1219_v17, %v988_v26 }
 0x199   : > { %v1221_v32 = vpop.eup %1220  ;;  %v1008_v33 = vmul.f32 %v1002_v27, %v990_v28 }
 0x19a   : > { %v1223_v34 = vpop.eup %1222  ;;  %v1016_v24 = vsel %vm998_vm12, %v1388_v23, %v1010_v29  ;;  %v1012_v35 = vmul.f32 %v1006_v63, %v994_v31  ;;  %v983_v36 = vmul.f32 %v1221_v32, %v971_v11 }
 0x19b   : > { %1023 = vst.msk [vmem:[%s1408_s26 + $0x10] sm:$0xff] %vm1022_vm11, %v1016_v24  ;;  %v1014_v37 = vsel %vm996_vm13, %v1390_v25, %v1008_v33  ;;  %v981_v38 = vmul.f32 %v1223_v34, %v969_v16 }
 0x19c   : > { %1020 = vst [vmem:[%s1408_s26] sm:$0xff] %v1014_v37  ;;  %v1018_v39 = vsel %vm1000_vm14, %v1392_v22, %v1012_v35  ;;  %v989_v40 = vsub.f32 2.0, %v983_v36 }
 0x19d   : > { %1025 = vst [vmem:[%s1408_s26 + $0x20] sm:$0xff] %v1018_v39  ;;  %v987_v30 = vsub.f32 2.0, %v981_v38 }
 0x19e   : > { %v995_v23 = vmul.f32 %v1221_v32, %v989_v40 }
 0x19f   : > { %v993_v41 = vmul.f32 %v1223_v34, %v987_v30 }
 0x1a0   : > { %v1013_v46 = vmul.f32 %v1007_v44, %v995_v23 }
 0x1a1   : > { %v1011_v25 = vmul.f32 %v1005_v45, %v993_v41 }
 0x1a2   : > { %v1019_v47 = vsel %vm1001_vm15, %v1397_v42, %v1013_v46 }
 0x1a3   : > { %1026 = vst.msk [vmem:[%s1408_s26 + $0x28] sm:$0xff] %vm1022_vm11, %v1019_v47  ;;  %v1017_v22 = vsel %vm999_vm0, %v1399_v43, %v1011_v25 }
 0x1a4   : > { %1024 = vst [vmem:[%s1408_s26 + $0x18] sm:$0xff] %v1017_v22 }
 0x1a5 PF: > { %s13_s12 = sadd.s32 1, %s1230_s12  }
 0x1a6   : > { %p10_p4 = scmp.ge.s32.totalorder %s13_s12, 4  }
 0x1a8   :  { %12 = sbr.rel (!%p10_p4) target bundleno = 1 (0x1), region = 70 }

</bundles_post_ra>
